<compile_context>
chip_gen: v6e
topology: v6e:2x2x1
jax: 0.10.0
libtpu: 0.0.40
codegen_flags: <defaults>
</compile_context>

<pallas_src>
import functools

import jax
import jax.numpy as jnp
from jax import lax
from jax.experimental import pallas as pl
from jax.experimental.pallas import tpu as pltpu


def _rfa_kernel(avg_ref, feat_ref, w1_ref, gsc_ref, gsh_ref, a_ref,
                osc_ref, osh_ref, o_ref):
    c = feat_ref.shape[0]
    acc = jnp.zeros(o_ref.shape, jnp.float32)                 # (out_ch, tm)

    # Per-channel processing keeps only one channel's (K2, tm) intermediates
    # live at a time and interleaves loads with compute; all math in f32
    # (v5e-safe VPU/EUP).  C is tiny & static, so the Python loop unrolls.
    for ci in range(c):
        avg_c = avg_ref[ci].astype(jnp.float32)               # (1,  tm)
        feat_c = feat_ref[ci].astype(jnp.float32)             # (K2, tm)

        # grouped 1x1 conv on pooled features: logits[n, m] = w1[c, n] * avg[c, m]
        logits = w1_ref[ci] * avg_c                           # (K2,1)*(1,tm) -> (K2,tm)

        # softmax over the K*K taps (sublane axis), per pixel
        mx = jnp.max(logits, axis=0, keepdims=True)
        e = jnp.exp(logits - mx)
        denom = jnp.sum(e, axis=0, keepdims=True)
        sm = e * pl.reciprocal(denom, approx=True)

        # BatchNorm (inference, folded to scale/shift) + ReLU, then re-weight
        wd = jnp.maximum(feat_c * gsc_ref[ci] + gsh_ref[ci], 0.0) * sm  # (K2, tm)

        # this channel's contribution to the final KxK / stride-K conv:
        # (out_ch, K2) @ (K2, tm) accumulated on the MXU into (out_ch, tm)
        acc = acc + jnp.dot(a_ref[ci], wd, preferred_element_type=jnp.float32)

    # fused conv-bias + output BatchNorm (inference) + ReLU; lane-dense store
    o_ref[...] = jnp.maximum(acc * osc_ref[...] + osh_ref[...],
                             0.0).astype(o_ref.dtype)


def rfaconv_forward(x, params, kernel_size, stride=1, tm=1024):
    b, c, H, W = x.shape
    k = kernel_size
    k2 = k * k
    p = k // 2
    eps = 1e-5

    w1 = params["w1"]                       # (c*k2, 1, 1, 1) get_weight 1x1 grouped conv
    wg = params["wg"]                       # (c*k2, 1, k, k) generate_feature depthwise conv
    bn1_g, bn1_b, bn1_m, bn1_v = params["bn1"]
    wc = params["wc"]                       # (out, c, k, k) final conv
    bc = params["bc"]                       # (out,)
    bn2_g, bn2_b, bn2_m, bn2_v = params["bn2"]
    out_ch = wc.shape[0]

    # channel-major view of the input (cheap: the input is the smallest tensor)
    x_cm = x.transpose(1, 0, 2, 3)                                  # (c, b, H, W)

    # ---- glue: AvgPool2d(k, padding=k//2, stride), count_include_pad=True ----
    avg = lax.reduce_window(
        x_cm, 0.0, lax.add,
        window_dimensions=(1, 1, k, k),
        window_strides=(1, 1, stride, stride),
        padding=[(0, 0), (0, 0), (p, p), (p, p)],
    ) / float(k2)                                                   # (c, b, h, w)

    # ---- glue: depthwise KxK conv (generate_feature conv, groups=c, no bias) --
    # channel-major output so the reshape into the kernel layout is copy-free
    feat_raw = lax.conv_general_dilated(
        x_cm, wg,
        window_strides=(stride, stride),
        padding=[(p, p), (p, p)],
        dimension_numbers=("CNHW", "OIHW", "CNHW"),
        feature_group_count=c,
    )                                                               # (c*k2, b, h, w)

    h, w = feat_raw.shape[2], feat_raw.shape[3]
    M = b * h * w

    # feature-major pixel columns; bf16 in HBM halves the dominant DMA bytes
    feat_fm = feat_raw.reshape(c, k2, M).astype(jnp.bfloat16)
    avg_fm = avg.reshape(c, 1, M).astype(jnp.bfloat16)

    # fold parameters into kernel-friendly shapes (all f32)
    w1_fm = w1.reshape(c, k2, 1)
    inv1 = bn1_g / jnp.sqrt(bn1_v + eps)
    gsc = inv1.reshape(c, k2, 1)
    gsh = (bn1_b - bn1_m * inv1).reshape(c, k2, 1)
    # A[c, o, n1*k+n2] = wc[o, c, n1, n2]
    a_mat = wc.reshape(out_ch, c, k2).transpose(1, 0, 2)            # (c, out_ch, k2)
    inv2 = bn2_g / jnp.sqrt(bn2_v + eps)
    osc = inv2.reshape(out_ch, 1)
    osh = (bn2_b + (bc - bn2_m) * inv2).reshape(out_ch, 1)

    # pixel-tile size: multiple of 128 lanes; VMEM-aware cap so double-buffered
    # input/output tiles stay well inside scoped VMEM on every chip; keep >= 2
    # grid steps when possible so v7x can shard the "parallel" axis across its
    # two TensorCores.
    k2_pad = ((k2 + 7) // 8) * 8
    out_pad = ((out_ch + 7) // 8) * 8
    bytes_per_pixel = 2 * c * (k2_pad + 8) + 4 * out_pad
    tm_cap = max(128, (((10 * 1024 * 1024) // (2 * bytes_per_pixel)) // 128) * 128)
    tm = max(128, (min(int(tm), 2048, tm_cap) // 128) * 128)
    while tm > 128 and pl.cdiv(M, tm) < 2:
        tm = max(128, ((tm // 2) // 128) * 128)
    Mp = pl.cdiv(M, tm) * tm
    if Mp != M:
        pad = Mp - M
        feat_fm = jnp.pad(feat_fm, ((0, 0), (0, 0), (0, pad)))
        avg_fm = jnp.pad(avg_fm, ((0, 0), (0, 0), (0, pad)))

    cost = pl.CostEstimate(
        flops=2 * Mp * c * k2 * out_ch + 8 * Mp * c * k2,
        transcendentals=Mp * c * (k2 + 1),
        bytes_accessed=int((feat_fm.size + avg_fm.size) * 2 + out_ch * Mp * 4),
    )

    out_fm = pl.pallas_call(
        _rfa_kernel,
        out_shape=jax.ShapeDtypeStruct((out_ch, Mp), jnp.float32),
        grid_spec=pltpu.PrefetchScalarGridSpec(
            num_scalar_prefetch=0,
            grid=(Mp // tm,),
            in_specs=[
                pl.BlockSpec((c, 1, tm), lambda i: (0, 0, i)),        # avg_fm
                pl.BlockSpec((c, k2, tm), lambda i: (0, 0, i)),       # feat_fm
                pl.BlockSpec((c, k2, 1), lambda i: (0, 0, 0)),        # w1
                pl.BlockSpec((c, k2, 1), lambda i: (0, 0, 0)),        # gsc (BN1 scale)
                pl.BlockSpec((c, k2, 1), lambda i: (0, 0, 0)),        # gsh (BN1 shift)
                pl.BlockSpec((c, out_ch, k2), lambda i: (0, 0, 0)),   # final conv weight
                pl.BlockSpec((out_ch, 1), lambda i: (0, 0)),          # osc (BN2 scale)
                pl.BlockSpec((out_ch, 1), lambda i: (0, 0)),          # osh (BN2 shift)
            ],
            out_specs=pl.BlockSpec((out_ch, tm), lambda i: (0, i)),   # lane-dense
        ),
        compiler_params=pltpu.CompilerParams(
            dimension_semantics=("parallel",),
            vmem_limit_bytes=32 * 1024 * 1024),
        cost_estimate=cost,
    )(avg_fm, feat_fm, w1_fm, gsc, gsh, a_mat, osc, osh)

    out_fm = out_fm[:, :M]
    return out_fm.reshape(out_ch, b, h, w).transpose(1, 0, 2, 3)    # NCHW


if __name__ == "__main__":
    B, C, H, W = 2, 4, 16, 16
    OUT = 8
    K = 3

    key = jax.random.PRNGKey(0)
    kx, kw1, kwg, kg1, kb1, kwc, kbc, kg2, kb2 = jax.random.split(key, 9)

    x = jax.random.normal(kx, (B, C, H, W), jnp.float32)

    params = {
        "w1": 0.2 * jax.random.normal(kw1, (C * K * K, 1, 1, 1), jnp.float32),
        "wg": 0.2 * jax.random.normal(kwg, (C * K * K, 1, K, K), jnp.float32),
        "bn1": (
            1.0 + 0.1 * jax.random.normal(kg1, (C * K * K,), jnp.float32),  # gamma
            0.1 * jax.random.normal(kb1, (C * K * K,), jnp.float32),        # beta
            jnp.zeros((C * K * K,), jnp.float32),                           # running_mean
            jnp.ones((C * K * K,), jnp.float32),                            # running_var
        ),
        "wc": 0.2 * jax.random.normal(kwc, (OUT, C, K, K), jnp.float32),
        "bc": 0.1 * jax.random.normal(kbc, (OUT,), jnp.float32),
        "bn2": (
            1.0 + 0.1 * jax.random.normal(kg2, (OUT,), jnp.float32),
            0.1 * jax.random.normal(kb2, (OUT,), jnp.float32),
            jnp.zeros((OUT,), jnp.float32),
            jnp.ones((OUT,), jnp.float32),
        ),
    }

    fwd = jax.jit(functools.partial(rfaconv_forward, kernel_size=K, stride=1))
    out = fwd(x, params)
    out = jax.block_until_ready(out)
    assert out.shape == (B, OUT, H, W), out.shape
    assert bool(jnp.all(jnp.isfinite(out)))
    print("KERNEL_OK")
</pallas_src>

<mosaic_0001>
module attributes {stable_mosaic.version = 11 : i64} {
  func.func @_rfa_kernel(%arg0: i32, %arg1: memref<4x1x256xbf16, #tpu.memory_space<vmem>>, %arg2: memref<4x9x256xbf16, #tpu.memory_space<vmem>>, %arg3: memref<4x9x1xf32, #tpu.memory_space<vmem>>, %arg4: memref<4x9x1xf32, #tpu.memory_space<vmem>>, %arg5: memref<4x9x1xf32, #tpu.memory_space<vmem>>, %arg6: memref<4x8x9xf32, #tpu.memory_space<vmem>>, %arg7: memref<8x1xf32, #tpu.memory_space<vmem>>, %arg8: memref<8x1xf32, #tpu.memory_space<vmem>>, %arg9: memref<8x256xf32, #tpu.memory_space<vmem>>) attributes {dimension_semantics = [#tpu.dimension_semantics<parallel>], iteration_bounds = array<i64: 2>, scalar_prefetch = 0 : i64, scratch_operands = 0 : i64, tpu.core_type = #tpu.core_type<tc>, window_params = [{transform_indices = @transform_0, window_bounds = array<i64: 4, 1, 256>}, {transform_indices = @transform_1, window_bounds = array<i64: 4, 9, 256>}, {pipeline_mode = #tpu.pipeline_mode<synchronous>, transform_indices = @transform_2, window_bounds = array<i64: 4, 9, 1>}, {pipeline_mode = #tpu.pipeline_mode<synchronous>, transform_indices = @transform_3, window_bounds = array<i64: 4, 9, 1>}, {pipeline_mode = #tpu.pipeline_mode<synchronous>, transform_indices = @transform_4, window_bounds = array<i64: 4, 9, 1>}, {pipeline_mode = #tpu.pipeline_mode<synchronous>, transform_indices = @transform_5, window_bounds = array<i64: 4, 8, 9>}, {pipeline_mode = #tpu.pipeline_mode<synchronous>, transform_indices = @transform_6, window_bounds = array<i64: 8, 1>}, {pipeline_mode = #tpu.pipeline_mode<synchronous>, transform_indices = @transform_7, window_bounds = array<i64: 8, 1>}, {transform_indices = @transform_8, window_bounds = array<i64: 8, 256>}]} {
    %cst = arith.constant 0.000000e+00 : f32
    %0 = vector.broadcast %cst : f32 to vector<8x256xf32>
    %c0 = arith.constant 0 : index
    %c0_0 = arith.constant 0 : index
    %c0_1 = arith.constant 0 : index
    %1 = vector.load %arg1[%c0, %c0_0, %c0_1] : memref<4x1x256xbf16, #tpu.memory_space<vmem>>, vector<1x1x256xbf16>
    %2 = vector.shape_cast %1 : vector<1x1x256xbf16> to vector<1x256xbf16>
    %3 = arith.extf %2 : vector<1x256xbf16> to vector<1x256xf32>
    %c0_2 = arith.constant 0 : index
    %c0_3 = arith.constant 0 : index
    %c0_4 = arith.constant 0 : index
    %4 = vector.load %arg2[%c0_2, %c0_3, %c0_4] : memref<4x9x256xbf16, #tpu.memory_space<vmem>>, vector<1x9x256xbf16>
    %5 = vector.shape_cast %4 : vector<1x9x256xbf16> to vector<9x256xbf16>
    %6 = arith.extf %5 : vector<9x256xbf16> to vector<9x256xf32>
    %c0_5 = arith.constant 0 : index
    %c0_6 = arith.constant 0 : index
    %c0_7 = arith.constant 0 : index
    %7 = vector.load %arg3[%c0_5, %c0_6, %c0_7] : memref<4x9x1xf32, #tpu.memory_space<vmem>>, vector<1x9x1xf32>
    %8 = vector.shape_cast %7 : vector<1x9x1xf32> to vector<9x1xf32>
    %9 = vector.broadcast %8 : vector<9x1xf32> to vector<9x256xf32>
    %10 = vector.broadcast %3 : vector<1x256xf32> to vector<9x256xf32>
    %11 = arith.mulf %9, %10 : vector<9x256xf32>
    %cst_8 = arith.constant dense<0xFF800000> : vector<256xf32>
    %12 = vector.multi_reduction <maximumf>, %11, %cst_8 [0] : vector<9x256xf32> to vector<256xf32>
    %13 = vector.shape_cast %12 : vector<256xf32> to vector<1x256xf32>
    %14 = vector.broadcast %13 : vector<1x256xf32> to vector<9x256xf32>
    %15 = arith.subf %11, %14 : vector<9x256xf32>
    %16 = math.exp %15 : vector<9x256xf32>
    %cst_9 = arith.constant dense<0.000000e+00> : vector<256xf32>
    %17 = vector.multi_reduction <add>, %16, %cst_9 [0] : vector<9x256xf32> to vector<256xf32>
    %18 = vector.shape_cast %17 : vector<256xf32> to vector<1x256xf32>
    %19 = tpu.reciprocal %18 {approx = true} : vector<1x256xf32> -> vector<1x256xf32>
    %20 = vector.broadcast %19 : vector<1x256xf32> to vector<9x256xf32>
    %21 = arith.mulf %16, %20 : vector<9x256xf32>
    %c0_10 = arith.constant 0 : index
    %c0_11 = arith.constant 0 : index
    %c0_12 = arith.constant 0 : index
    %22 = vector.load %arg4[%c0_10, %c0_11, %c0_12] : memref<4x9x1xf32, #tpu.memory_space<vmem>>, vector<1x9x1xf32>
    %23 = vector.shape_cast %22 : vector<1x9x1xf32> to vector<9x1xf32>
    %24 = vector.broadcast %23 : vector<9x1xf32> to vector<9x256xf32>
    %25 = arith.mulf %6, %24 : vector<9x256xf32>
    %c0_13 = arith.constant 0 : index
    %c0_14 = arith.constant 0 : index
    %c0_15 = arith.constant 0 : index
    %26 = vector.load %arg5[%c0_13, %c0_14, %c0_15] : memref<4x9x1xf32, #tpu.memory_space<vmem>>, vector<1x9x1xf32>
    %27 = vector.shape_cast %26 : vector<1x9x1xf32> to vector<9x1xf32>
    %28 = vector.broadcast %27 : vector<9x1xf32> to vector<9x256xf32>
    %29 = arith.addf %25, %28 : vector<9x256xf32>
    %cst_16 = arith.constant 0.000000e+00 : f32
    %30 = vector.broadcast %cst_16 : f32 to vector<9x256xf32>
    %31 = arith.maximumf %29, %30 : vector<9x256xf32>
    %32 = arith.mulf %31, %21 : vector<9x256xf32>
    %c0_17 = arith.constant 0 : index
    %c0_18 = arith.constant 0 : index
    %c0_19 = arith.constant 0 : index
    %33 = vector.load %arg6[%c0_17, %c0_18, %c0_19] : memref<4x8x9xf32, #tpu.memory_space<vmem>>, vector<1x8x9xf32>
    %34 = vector.shape_cast %33 : vector<1x8x9xf32> to vector<8x9xf32>
    %cst_20 = arith.constant dense<0.000000e+00> : vector<8x256xf32>
    %35 = tpu.matmul %34, %32, %cst_20 {dimension_numbers = #tpu.dot_dimension_numbers<[1], [0], [0], [1], [0, 0, 1, 1], [], []>} : vector<8x9xf32>, vector<9x256xf32>, vector<8x256xf32> -> vector<8x256xf32>
    %36 = arith.addf %0, %35 : vector<8x256xf32>
    %c1 = arith.constant 1 : index
    %c0_21 = arith.constant 0 : index
    %c0_22 = arith.constant 0 : index
    %37 = vector.load %arg1[%c1, %c0_21, %c0_22] : memref<4x1x256xbf16, #tpu.memory_space<vmem>>, vector<1x1x256xbf16>
    %38 = vector.shape_cast %37 : vector<1x1x256xbf16> to vector<1x256xbf16>
    %39 = arith.extf %38 : vector<1x256xbf16> to vector<1x256xf32>
    %c1_23 = arith.constant 1 : index
    %c0_24 = arith.constant 0 : index
    %c0_25 = arith.constant 0 : index
    %40 = vector.load %arg2[%c1_23, %c0_24, %c0_25] : memref<4x9x256xbf16, #tpu.memory_space<vmem>>, vector<1x9x256xbf16>
    %41 = vector.shape_cast %40 : vector<1x9x256xbf16> to vector<9x256xbf16>
    %42 = arith.extf %41 : vector<9x256xbf16> to vector<9x256xf32>
    %c1_26 = arith.constant 1 : index
    %c0_27 = arith.constant 0 : index
    %c0_28 = arith.constant 0 : index
    %43 = vector.load %arg3[%c1_26, %c0_27, %c0_28] : memref<4x9x1xf32, #tpu.memory_space<vmem>>, vector<1x9x1xf32>
    %44 = vector.shape_cast %43 : vector<1x9x1xf32> to vector<9x1xf32>
    %45 = vector.broadcast %44 : vector<9x1xf32> to vector<9x256xf32>
    %46 = vector.broadcast %39 : vector<1x256xf32> to vector<9x256xf32>
    %47 = arith.mulf %45, %46 : vector<9x256xf32>
    %cst_29 = arith.constant dense<0xFF800000> : vector<256xf32>
    %48 = vector.multi_reduction <maximumf>, %47, %cst_29 [0] : vector<9x256xf32> to vector<256xf32>
    %49 = vector.shape_cast %48 : vector<256xf32> to vector<1x256xf32>
    %50 = vector.broadcast %49 : vector<1x256xf32> to vector<9x256xf32>
    %51 = arith.subf %47, %50 : vector<9x256xf32>
    %52 = math.exp %51 : vector<9x256xf32>
    %cst_30 = arith.constant dense<0.000000e+00> : vector<256xf32>
    %53 = vector.multi_reduction <add>, %52, %cst_30 [0] : vector<9x256xf32> to vector<256xf32>
    %54 = vector.shape_cast %53 : vector<256xf32> to vector<1x256xf32>
    %55 = tpu.reciprocal %54 {approx = true} : vector<1x256xf32> -> vector<1x256xf32>
    %56 = vector.broadcast %55 : vector<1x256xf32> to vector<9x256xf32>
    %57 = arith.mulf %52, %56 : vector<9x256xf32>
    %c1_31 = arith.constant 1 : index
    %c0_32 = arith.constant 0 : index
    %c0_33 = arith.constant 0 : index
    %58 = vector.load %arg4[%c1_31, %c0_32, %c0_33] : memref<4x9x1xf32, #tpu.memory_space<vmem>>, vector<1x9x1xf32>
    %59 = vector.shape_cast %58 : vector<1x9x1xf32> to vector<9x1xf32>
    %60 = vector.broadcast %59 : vector<9x1xf32> to vector<9x256xf32>
    %61 = arith.mulf %42, %60 : vector<9x256xf32>
    %c1_34 = arith.constant 1 : index
    %c0_35 = arith.constant 0 : index
    %c0_36 = arith.constant 0 : index
    %62 = vector.load %arg5[%c1_34, %c0_35, %c0_36] : memref<4x9x1xf32, #tpu.memory_space<vmem>>, vector<1x9x1xf32>
    %63 = vector.shape_cast %62 : vector<1x9x1xf32> to vector<9x1xf32>
    %64 = vector.broadcast %63 : vector<9x1xf32> to vector<9x256xf32>
    %65 = arith.addf %61, %64 : vector<9x256xf32>
    %cst_37 = arith.constant 0.000000e+00 : f32
    %66 = vector.broadcast %cst_37 : f32 to vector<9x256xf32>
    %67 = arith.maximumf %65, %66 : vector<9x256xf32>
    %68 = arith.mulf %67, %57 : vector<9x256xf32>
    %c1_38 = arith.constant 1 : index
    %c0_39 = arith.constant 0 : index
    %c0_40 = arith.constant 0 : index
    %69 = vector.load %arg6[%c1_38, %c0_39, %c0_40] : memref<4x8x9xf32, #tpu.memory_space<vmem>>, vector<1x8x9xf32>
    %70 = vector.shape_cast %69 : vector<1x8x9xf32> to vector<8x9xf32>
    %cst_41 = arith.constant dense<0.000000e+00> : vector<8x256xf32>
    %71 = tpu.matmul %70, %68, %cst_41 {dimension_numbers = #tpu.dot_dimension_numbers<[1], [0], [0], [1], [0, 0, 1, 1], [], []>} : vector<8x9xf32>, vector<9x256xf32>, vector<8x256xf32> -> vector<8x256xf32>
    %72 = arith.addf %36, %71 : vector<8x256xf32>
    %c2 = arith.constant 2 : index
    %c0_42 = arith.constant 0 : index
    %c0_43 = arith.constant 0 : index
    %73 = vector.load %arg1[%c2, %c0_42, %c0_43] : memref<4x1x256xbf16, #tpu.memory_space<vmem>>, vector<1x1x256xbf16>
    %74 = vector.shape_cast %73 : vector<1x1x256xbf16> to vector<1x256xbf16>
    %75 = arith.extf %74 : vector<1x256xbf16> to vector<1x256xf32>
    %c2_44 = arith.constant 2 : index
    %c0_45 = arith.constant 0 : index
    %c0_46 = arith.constant 0 : index
    %76 = vector.load %arg2[%c2_44, %c0_45, %c0_46] : memref<4x9x256xbf16, #tpu.memory_space<vmem>>, vector<1x9x256xbf16>
    %77 = vector.shape_cast %76 : vector<1x9x256xbf16> to vector<9x256xbf16>
    %78 = arith.extf %77 : vector<9x256xbf16> to vector<9x256xf32>
    %c2_47 = arith.constant 2 : index
    %c0_48 = arith.constant 0 : index
    %c0_49 = arith.constant 0 : index
    %79 = vector.load %arg3[%c2_47, %c0_48, %c0_49] : memref<4x9x1xf32, #tpu.memory_space<vmem>>, vector<1x9x1xf32>
    %80 = vector.shape_cast %79 : vector<1x9x1xf32> to vector<9x1xf32>
    %81 = vector.broadcast %80 : vector<9x1xf32> to vector<9x256xf32>
    %82 = vector.broadcast %75 : vector<1x256xf32> to vector<9x256xf32>
    %83 = arith.mulf %81, %82 : vector<9x256xf32>
    %cst_50 = arith.constant dense<0xFF800000> : vector<256xf32>
    %84 = vector.multi_reduction <maximumf>, %83, %cst_50 [0] : vector<9x256xf32> to vector<256xf32>
    %85 = vector.shape_cast %84 : vector<256xf32> to vector<1x256xf32>
    %86 = vector.broadcast %85 : vector<1x256xf32> to vector<9x256xf32>
    %87 = arith.subf %83, %86 : vector<9x256xf32>
    %88 = math.exp %87 : vector<9x256xf32>
    %cst_51 = arith.constant dense<0.000000e+00> : vector<256xf32>
    %89 = vector.multi_reduction <add>, %88, %cst_51 [0] : vector<9x256xf32> to vector<256xf32>
    %90 = vector.shape_cast %89 : vector<256xf32> to vector<1x256xf32>
    %91 = tpu.reciprocal %90 {approx = true} : vector<1x256xf32> -> vector<1x256xf32>
    %92 = vector.broadcast %91 : vector<1x256xf32> to vector<9x256xf32>
    %93 = arith.mulf %88, %92 : vector<9x256xf32>
    %c2_52 = arith.constant 2 : index
    %c0_53 = arith.constant 0 : index
    %c0_54 = arith.constant 0 : index
    %94 = vector.load %arg4[%c2_52, %c0_53, %c0_54] : memref<4x9x1xf32, #tpu.memory_space<vmem>>, vector<1x9x1xf32>
    %95 = vector.shape_cast %94 : vector<1x9x1xf32> to vector<9x1xf32>
    %96 = vector.broadcast %95 : vector<9x1xf32> to vector<9x256xf32>
    %97 = arith.mulf %78, %96 : vector<9x256xf32>
    %c2_55 = arith.constant 2 : index
    %c0_56 = arith.constant 0 : index
    %c0_57 = arith.constant 0 : index
    %98 = vector.load %arg5[%c2_55, %c0_56, %c0_57] : memref<4x9x1xf32, #tpu.memory_space<vmem>>, vector<1x9x1xf32>
    %99 = vector.shape_cast %98 : vector<1x9x1xf32> to vector<9x1xf32>
    %100 = vector.broadcast %99 : vector<9x1xf32> to vector<9x256xf32>
    %101 = arith.addf %97, %100 : vector<9x256xf32>
    %cst_58 = arith.constant 0.000000e+00 : f32
    %102 = vector.broadcast %cst_58 : f32 to vector<9x256xf32>
    %103 = arith.maximumf %101, %102 : vector<9x256xf32>
    %104 = arith.mulf %103, %93 : vector<9x256xf32>
    %c2_59 = arith.constant 2 : index
    %c0_60 = arith.constant 0 : index
    %c0_61 = arith.constant 0 : index
    %105 = vector.load %arg6[%c2_59, %c0_60, %c0_61] : memref<4x8x9xf32, #tpu.memory_space<vmem>>, vector<1x8x9xf32>
    %106 = vector.shape_cast %105 : vector<1x8x9xf32> to vector<8x9xf32>
    %cst_62 = arith.constant dense<0.000000e+00> : vector<8x256xf32>
    %107 = tpu.matmul %106, %104, %cst_62 {dimension_numbers = #tpu.dot_dimension_numbers<[1], [0], [0], [1], [0, 0, 1, 1], [], []>} : vector<8x9xf32>, vector<9x256xf32>, vector<8x256xf32> -> vector<8x256xf32>
    %108 = arith.addf %72, %107 : vector<8x256xf32>
    %c3 = arith.constant 3 : index
    %c0_63 = arith.constant 0 : index
    %c0_64 = arith.constant 0 : index
    %109 = vector.load %arg1[%c3, %c0_63, %c0_64] : memref<4x1x256xbf16, #tpu.memory_space<vmem>>, vector<1x1x256xbf16>
    %110 = vector.shape_cast %109 : vector<1x1x256xbf16> to vector<1x256xbf16>
    %111 = arith.extf %110 : vector<1x256xbf16> to vector<1x256xf32>
    %c3_65 = arith.constant 3 : index
    %c0_66 = arith.constant 0 : index
    %c0_67 = arith.constant 0 : index
    %112 = vector.load %arg2[%c3_65, %c0_66, %c0_67] : memref<4x9x256xbf16, #tpu.memory_space<vmem>>, vector<1x9x256xbf16>
    %113 = vector.shape_cast %112 : vector<1x9x256xbf16> to vector<9x256xbf16>
    %114 = arith.extf %113 : vector<9x256xbf16> to vector<9x256xf32>
    %c3_68 = arith.constant 3 : index
    %c0_69 = arith.constant 0 : index
    %c0_70 = arith.constant 0 : index
    %115 = vector.load %arg3[%c3_68, %c0_69, %c0_70] : memref<4x9x1xf32, #tpu.memory_space<vmem>>, vector<1x9x1xf32>
    %116 = vector.shape_cast %115 : vector<1x9x1xf32> to vector<9x1xf32>
    %117 = vector.broadcast %116 : vector<9x1xf32> to vector<9x256xf32>
    %118 = vector.broadcast %111 : vector<1x256xf32> to vector<9x256xf32>
    %119 = arith.mulf %117, %118 : vector<9x256xf32>
    %cst_71 = arith.constant dense<0xFF800000> : vector<256xf32>
    %120 = vector.multi_reduction <maximumf>, %119, %cst_71 [0] : vector<9x256xf32> to vector<256xf32>
    %121 = vector.shape_cast %120 : vector<256xf32> to vector<1x256xf32>
    %122 = vector.broadcast %121 : vector<1x256xf32> to vector<9x256xf32>
    %123 = arith.subf %119, %122 : vector<9x256xf32>
    %124 = math.exp %123 : vector<9x256xf32>
    %cst_72 = arith.constant dense<0.000000e+00> : vector<256xf32>
    %125 = vector.multi_reduction <add>, %124, %cst_72 [0] : vector<9x256xf32> to vector<256xf32>
    %126 = vector.shape_cast %125 : vector<256xf32> to vector<1x256xf32>
    %127 = tpu.reciprocal %126 {approx = true} : vector<1x256xf32> -> vector<1x256xf32>
    %128 = vector.broadcast %127 : vector<1x256xf32> to vector<9x256xf32>
    %129 = arith.mulf %124, %128 : vector<9x256xf32>
    %c3_73 = arith.constant 3 : index
    %c0_74 = arith.constant 0 : index
    %c0_75 = arith.constant 0 : index
    %130 = vector.load %arg4[%c3_73, %c0_74, %c0_75] : memref<4x9x1xf32, #tpu.memory_space<vmem>>, vector<1x9x1xf32>
    %131 = vector.shape_cast %130 : vector<1x9x1xf32> to vector<9x1xf32>
    %132 = vector.broadcast %131 : vector<9x1xf32> to vector<9x256xf32>
    %133 = arith.mulf %114, %132 : vector<9x256xf32>
    %c3_76 = arith.constant 3 : index
    %c0_77 = arith.constant 0 : index
    %c0_78 = arith.constant 0 : index
    %134 = vector.load %arg5[%c3_76, %c0_77, %c0_78] : memref<4x9x1xf32, #tpu.memory_space<vmem>>, vector<1x9x1xf32>
    %135 = vector.shape_cast %134 : vector<1x9x1xf32> to vector<9x1xf32>
    %136 = vector.broadcast %135 : vector<9x1xf32> to vector<9x256xf32>
    %137 = arith.addf %133, %136 : vector<9x256xf32>
    %cst_79 = arith.constant 0.000000e+00 : f32
    %138 = vector.broadcast %cst_79 : f32 to vector<9x256xf32>
    %139 = arith.maximumf %137, %138 : vector<9x256xf32>
    %140 = arith.mulf %139, %129 : vector<9x256xf32>
    %c3_80 = arith.constant 3 : index
    %c0_81 = arith.constant 0 : index
    %c0_82 = arith.constant 0 : index
    %141 = vector.load %arg6[%c3_80, %c0_81, %c0_82] : memref<4x8x9xf32, #tpu.memory_space<vmem>>, vector<1x8x9xf32>
    %142 = vector.shape_cast %141 : vector<1x8x9xf32> to vector<8x9xf32>
    %cst_83 = arith.constant dense<0.000000e+00> : vector<8x256xf32>
    %143 = tpu.matmul %142, %140, %cst_83 {dimension_numbers = #tpu.dot_dimension_numbers<[1], [0], [0], [1], [0, 0, 1, 1], [], []>} : vector<8x9xf32>, vector<9x256xf32>, vector<8x256xf32> -> vector<8x256xf32>
    %144 = arith.addf %108, %143 : vector<8x256xf32>
    %c0_84 = arith.constant 0 : index
    %c0_85 = arith.constant 0 : index
    %145 = vector.load %arg7[%c0_84, %c0_85] : memref<8x1xf32, #tpu.memory_space<vmem>>, vector<8x1xf32>
    %146 = vector.broadcast %145 : vector<8x1xf32> to vector<8x256xf32>
    %147 = arith.mulf %144, %146 : vector<8x256xf32>
    %c0_86 = arith.constant 0 : index
    %c0_87 = arith.constant 0 : index
    %148 = vector.load %arg8[%c0_86, %c0_87] : memref<8x1xf32, #tpu.memory_space<vmem>>, vector<8x1xf32>
    %149 = vector.broadcast %148 : vector<8x1xf32> to vector<8x256xf32>
    %150 = arith.addf %147, %149 : vector<8x256xf32>
    %cst_88 = arith.constant 0.000000e+00 : f32
    %151 = vector.broadcast %cst_88 : f32 to vector<8x256xf32>
    %152 = arith.maximumf %150, %151 : vector<8x256xf32>
    %c0_89 = arith.constant 0 : index
    %c0_90 = arith.constant 0 : index
    %153 = vector.load %arg9[%c0_89, %c0_90] : memref<8x256xf32, #tpu.memory_space<vmem>>, vector<8x256xf32>
    tpu.vector_store %arg9[%c0_89, %c0_90], %152 {strides = array<i32>} : memref<8x256xf32, #tpu.memory_space<vmem>>, vector<8x256xf32>,
    return
  }
  func.func @transform_0(%arg0: i32) -> (i32, i32, i32) {
    %c0_i32 = arith.constant 0 : i32
    %c0_i32_0 = arith.constant 0 : i32
    %c0_i32_1 = arith.constant 0 : i32
    return %c0_i32, %c0_i32_0, %arg0 : i32, i32, i32
  }
  func.func @transform_1(%arg0: i32) -> (i32, i32, i32) {
    %c0_i32 = arith.constant 0 : i32
    %c0_i32_0 = arith.constant 0 : i32
    %c0_i32_1 = arith.constant 0 : i32
    return %c0_i32, %c0_i32_0, %arg0 : i32, i32, i32
  }
  func.func @transform_2(%arg0: i32) -> (i32, i32, i32) {
    %c0_i32 = arith.constant 0 : i32
    %c0_i32_0 = arith.constant 0 : i32
    %c0_i32_1 = arith.constant 0 : i32
    %c0_i32_2 = arith.constant 0 : i32
    return %c0_i32, %c0_i32_0, %c0_i32_1 : i32, i32, i32
  }
  func.func @transform_3(%arg0: i32) -> (i32, i32, i32) {
    %c0_i32 = arith.constant 0 : i32
    %c0_i32_0 = arith.constant 0 : i32
    %c0_i32_1 = arith.constant 0 : i32
    %c0_i32_2 = arith.constant 0 : i32
    return %c0_i32, %c0_i32_0, %c0_i32_1 : i32, i32, i32
  }
  func.func @transform_4(%arg0: i32) -> (i32, i32, i32) {
    %c0_i32 = arith.constant 0 : i32
    %c0_i32_0 = arith.constant 0 : i32
    %c0_i32_1 = arith.constant 0 : i32
    %c0_i32_2 = arith.constant 0 : i32
    return %c0_i32, %c0_i32_0, %c0_i32_1 : i32, i32, i32
  }
  func.func @transform_5(%arg0: i32) -> (i32, i32, i32) {
    %c0_i32 = arith.constant 0 : i32
    %c0_i32_0 = arith.constant 0 : i32
    %c0_i32_1 = arith.constant 0 : i32
    %c0_i32_2 = arith.constant 0 : i32
    return %c0_i32, %c0_i32_0, %c0_i32_1 : i32, i32, i32
  }
  func.func @transform_6(%arg0: i32) -> (i32, i32) {
    %c0_i32 = arith.constant 0 : i32
    %c0_i32_0 = arith.constant 0 : i32
    %c0_i32_1 = arith.constant 0 : i32
    return %c0_i32, %c0_i32_0 : i32, i32
  }
  func.func @transform_7(%arg0: i32) -> (i32, i32) {
    %c0_i32 = arith.constant 0 : i32
    %c0_i32_0 = arith.constant 0 : i32
    %c0_i32_1 = arith.constant 0 : i32
    return %c0_i32, %c0_i32_0 : i32, i32
  }
  func.func @transform_8(%arg0: i32) -> (i32, i32) {
    %c0_i32 = arith.constant 0 : i32
    %c0_i32_0 = arith.constant 0 : i32
    return %c0_i32, %arg0 : i32, i32
  }
}

</mosaic_0001>

<bundles_post_ra>
// kernel: rfaconv_forward.1
= control target key start
LH: loop header
LB: loop body
LE: loop exit
PB: predicated region body
PF: predicated region fallthrough
CT: control target
= control target key end

     0   :  { %s1634_s27 = smov 0   ;;  %s1636_s28 = smov 0   ;;  %s2043_s0 = inlined_call_operand.vmem [shape: bf16[4,1,512], index: 0, kind: input, shape index: {}]   ;;  %s2044_s1 = inlined_call_operand.vmem [shape: bf16[4,9,512], index: 1, kind: input, shape index: {}]   ;;  %s2045_s2 = inlined_call_operand.vmem [shape: f32[4,9,1], index: 2, kind: input, shape index: {}]   ;;  %s2046_s3 = inlined_call_operand.vmem [shape: f32[4,9,1], index: 3, kind: input, shape index: {}]   ;;  %s2047_s4 = inlined_call_operand.vmem [shape: f32[4,9,1], index: 4, kind: input, shape index: {}]   ;;  %s2048_s5 = inlined_call_operand.vmem [shape: f32[4,8,9], index: 5, kind: input, shape index: {}]   ;;  %s2049_s6 = inlined_call_operand.vmem [shape: f32[8,1], index: 6, kind: input, shape index: {}]   ;;  %s2050_s7 = inlined_call_operand.vmem [shape: f32[8,1], index: 7, kind: input, shape index: {}]   ;;  %s2051_s8 = inlined_call_operand.vmem [shape: f32[8,512], index: 8, kind: output, shape index: {}]  }
   0x1   :  { %s1638_s29 = smov 0  }
   0x2 LB: > { %s1428_s30 = sadd.s32 4294967295, %s1585_s29   ;;  %s1651_s9 = sadd.s32 1, %s1585_s29   ;;  %s1585_s29 = sphi %s1638_s29, %s2058_s29   ;;  %s1581_s28 = sphi %s1636_s28, %s2057_s28   ;;  %s1577_s27 = sphi %s1634_s27, %s2056_s27  }
   0x3   : > { %s22_s10 = ssub.s32 %s1585_s29, %s1651_s9  ;;  %s25_s11 = sadd.s32 1, %s1581_s28 }
   0x4   : > { %p23_p0 = scmp.eq.s32.totalorder %s22_s10, 0  ;;  %p32_p1 = scmp.ne.s32.totalorder %s1581_s28, %s1577_s27 }
   0x5   : > { %p33_p2 = scmp.eq.s32.totalorder %s1585_s29, 0  ;;  %p1431_p4 = scmp.ge.s32.totalorder %s1585_s29, 2 }
   0x6   : > { %s1660_s12 = scalar_select %p23_p0, %s1581_s28, %s25_s11  }
   0x7   : > { %p1662_p3 = por %p33_p2, %p32_p1  ;;  %254 = sbr.rel (%p1431_p4) target bundleno = 26 (0x1a), region = 40 }
   0xc   : > { %257 = sbr.rel (!%p1662_p3) target bundleno = 18 (0x12), region = 44  ;;  %s259_s14 = sand.u32 (%p1662_p3), 1, %s1581_s28  }
   0xd   : > { %s1433_s15 = sshll.u32 (%p1662_p3), %s1585_s29, 1  ;;  %s1432_s16 = sshll.u32 (%p1662_p3), %s259_s14, 3 }
   0xe   : > { %s263_s19 = scalar_lea.vmem (%p1662_p3), %s2043_s0, %s1433_s15  ;;  %s261_s20 = scalar_lea.vmem (%p1662_p3), [#allocation2], %s1432_s16 }
   0xf   : > { %v280_v0 = vld [vmem:[%s263_s19] sm:$0x3] (%p1662_p3)  ;;  %v282_v1 = vld [vmem:[%s263_s19 + $0x4] sm:$0x3] (%p1662_p3)  ;;  %v284_v2 = vld [vmem:[%s263_s19 + $0x8] sm:$0x3] (%p1662_p3) }
  0x10   : > { %281 = vst [vmem:[%s261_s20] sm:$0x3] (%p1662_p3), %v280_v0  ;;  %283 = vst [vmem:[%s261_s20 + $0x2] sm:$0x3] (%p1662_p3), %v282_v1  ;;  %v286_v3 = vld [vmem:[%s263_s19 + $0xc] sm:$0x3] (%p1662_p3) }
  0x11   : > { %285 = vst [vmem:[%s261_s20 + $0x4] sm:$0x3] %v284_v2  ;;  %287 = vst [vmem:[%s261_s20 + $0x6] sm:$0x3] %v286_v3 }
  0x12 PF: > { %319 = sbr.rel (!%p1662_p3) target bundleno = 26 (0x1a), region = 85  ;;  %s321_s21 = sand.u32 (%p1662_p3), 1, %s1581_s28  }
  0x13   : > { %s1486_s22 = sshll.u32 (%p1662_p3), %s1585_s29, 3  ;;  %s1434_s23 = sshll.u32 (%p1662_p3), %s321_s21, 6 }
  0x14   : > { %s326_s26 = scalar_lea.vmem (%p1662_p3), %s2044_s1, %s1486_s22  ;;  %s323_s10 = scalar_lea.vmem (%p1662_p3), [#allocation3], %s1434_s23 }
  0x15   : > { %v369_v4 = vld [vmem:[%s326_s26] sm:$0xff] (%p1662_p3)  ;;  %v371_v5 = vld [vmem:[%s326_s26 + $0x10] sm:$0xff] (%p1662_p3) }
  0x16   : > { %v373_v6 = vld [vmem:[%s326_s26 + $0x20] sm:$0xff] (%p1662_p3)  ;;  %370 = vst [vmem:[%s323_s10] sm:$0xff] (%p1662_p3), %v369_v4  ;;  %372 = vst [vmem:[%s323_s10 + $0x8] sm:$0xff] (%p1662_p3), %v371_v5  ;;  %v375_v7 = vld [vmem:[%s326_s26 + $0x30] sm:$0xff] (%p1662_p3) }
  0x17   : > { %374 = vst [vmem:[%s323_s10 + $0x10] sm:$0xff] %v373_v6  ;;  %v377_v8 = vld [vmem:[%s326_s26 + $0x40] sm:$0xff]  ;;  %v379_v9 = vld [vmem:[%s326_s26 + $0x50] sm:$0xff]  ;;  %376 = vst [vmem:[%s323_s10 + $0x18] sm:$0xff] %v375_v7 }
  0x18   : > { %378 = vst [vmem:[%s323_s10 + $0x20] sm:$0xff] %v377_v8  ;;  %380 = vst [vmem:[%s323_s10 + $0x28] sm:$0xff] %v379_v9  ;;  %v381_v10 = vld [vmem:[%s326_s26 + $0x60] sm:$0xff]  ;;  %v383_v11 = vld [vmem:[%s326_s26 + $0x70] sm:$0xff] }
  0x19   : > { %382 = vst [vmem:[%s323_s10 + $0x30] sm:$0xff] %v381_v10  ;;  %384 = vst [vmem:[%s323_s10 + $0x38] sm:$0xff] %v383_v11 }
  0x1a PF: > { %p1437_p5 = scmp.ge.s32.totalorder %s1585_s29, 1  ;;  %p389_p6 = scmp.lt.s32.totalorder %s1585_s29, 3 }
  0x1c   : > { %p390_p7 = pnand %p1437_p5, %p389_p6 }
  0x1d   : > { %s396_s16 = sand.u32 (!%p390_p7), 1, %s1577_s27   ;;  %s1440_s11 = sshll.u32 (!%p390_p7), %s1428_s30, 1 }
  0x1e   : > { %393 = sbr.rel (%p390_p7) target bundleno = 459 (0x1cb), region = 123  ;;  %s1438_s17 = sshll.u32 (!%p390_p7), %s396_s16, 3 }
  0x1f   : > { %s398_s18 = scalar_lea.vmem (!%p390_p7), [#allocation2], %s1438_s17  ;;  %s1439_s19 = sshll.u32 (!%p390_p7), %s396_s16, 6 }
  0x20   : > { %s1892_s27 = scalar_lea.vmem (!%p390_p7), [#allocation3], %s1439_s19  ;;  %p443_p8 = scmp.lt.s32.totalorder (!%p390_p7), %s1440_s11, 3 }
  0x23   : > { %v1446_v12 = vld [vmem:[%s2045_s2 + $0x18] sm:$0x1]  ;;  %v457_v13 = vld [vmem:[%s2045_s2 + $0x8] sm:$0x1]  ;;  %v1587_v14 = vmov 0   ;;  %v1445_v15 = vld [vmem:[%s2045_s2 + $0x10] sm:$0xff]  ;;  %v469_v40 = vlaneseq }
  0x24   : > { %1514 = vset.pattern.permute.xlu1 %v1587_v14  ;;  %1513 = vset.pattern.permute.xlu0 %v1587_v14  ;;  %v456_v16 = vld [vmem:[%s2045_s2] sm:$0xff]  ;;  %v1462_v17 = vld [vmem:[%s2045_s2 + $0x28] sm:$0x1]  ;;  %v1475_v19 = vld [vmem:[%s2045_s2 + $0x38] sm:$0x1]  ;;  %v2052_v39 = vmov 0.0  }
  0x25   : > { %603 = vperm.xlu0 %1513, %v1446_v12   ;;  %465 = vperm.xlu1 %1514, %v457_v13   ;;  %v1461_v18 = vld [vmem:[%s2045_s2 + $0x20] sm:$0xff]  ;;  %v1474_v20 = vld [vmem:[%s2045_s2 + $0x30] sm:$0xff]  ;;  %v1448_v21 = vld [vmem:[%s2046_s3 + $0x18] sm:$0x1]  ;;  %v470_v41 = vshrl.u32 %v469_v40, 7  ;;  %vm491_vm0 = vcmask 1040384  }
  0x26   : > { %v543_v22 = vld [vmem:[%s2046_s3 + $0x8] sm:$0x1]  ;;  %v1447_v23 = vld [vmem:[%s2046_s3 + $0x10] sm:$0xff]  ;;  %v1450_v24 = vld [vmem:[%s2047_s4 + $0x18] sm:$0x1]  ;;  %797 = vmatprep.mubr.f32.mxu0 %v2052_v39  ;;  %877 = vmatprep.mubr.f32.mxu1 %v2052_v39  ;;  %vm723_vm1 = vcmask 72704  }
  0x27   : > { %v542_v25 = vld [vmem:[%s2046_s3] sm:$0xff]  ;;  %v559_v26 = vld [vmem:[%s2047_s4 + $0x8] sm:$0x1]  ;;  %v1449_v27 = vld [vmem:[%s2047_s4 + $0x10] sm:$0xff]  ;;  %v471_v44 = vsub.s32 0, %v470_v41  ;;  %v475_v45 = vsub.s32 2, %v470_v41 }
  0x28   : > { %v1464_v28 = vld [vmem:[%s2046_s3 + $0x28] sm:$0x1]  ;;  %v558_v29 = vld [vmem:[%s2047_s4] sm:$0xff]  ;;  %v1477_v32 = vld [vmem:[%s2046_s3 + $0x38] sm:$0x1]  ;;  %s2060_s11 = smov (!%p443_p8, %s1440_s11), 3 }
  0x29   : > { %598 = vperm.xlu0 %1513, %v1445_v15   ;;  %460 = vperm.xlu1 %1514, %v456_v16   ;;  %v1463_v30 = vld [vmem:[%s2046_s3 + $0x20] sm:$0xff]  ;;  %v1466_v31 = vld [vmem:[%s2047_s4 + $0x28] sm:$0x1]  ;;  %v1476_v34 = vld [vmem:[%s2046_s3 + $0x30] sm:$0xff]  ;;  %s1441_s13 = sshll.u32 %s2060_s11, 3 }
  0x2a   : > { %v1465_v33 = vld [vmem:[%s2047_s4 + $0x20] sm:$0xff]  ;;  %v1479_v35 = vld [vmem:[%s2047_s4 + $0x38] sm:$0x1]  ;;  %v1478_v36 = vld [vmem:[%s2047_s4 + $0x30] sm:$0xff]  ;;  %s446_s14 = scalar_lea.vmem %s2051_s8, %s1441_s13 }
  0x2b   : > { %v1328_v37 = vld [vmem:[%s2049_s6] sm:$0xff] }
  0x2c   : > { %v1336_v38 = vld [vmem:[%s2050_s7] sm:$0xff] }
  0x2d   : > { %904 = vperm.xlu0 %1513, %v1462_v17   ;;  %899 = vperm.xlu1 %1514, %v1461_v18   ;;  %v1442_v42 = vld [vmem:[%s398_s18 + $0x2] sm:$0x3]  ;;  %v448_v43 = vld [vmem:[%s398_s18] sm:$0x3]  ;;  %v1458_v48 = vld [vmem:[%s398_s18 + $0x4] sm:$0x3] }
  0x2e   : > { %v585_v46 = vunpack.c.l.bf16 %v1442_v42  ;;  %v449_v47 = vunpack.c.l.bf16 %v448_v43  ;;  %v886_v53 = vunpack.c.l.bf16 %v1458_v48  ;;  %v1471_v54 = vld [vmem:[%s398_s18 + $0x6] sm:$0x3] }
  0x2f   : > { %v1108_v63 = vunpack.c.l.bf16 %v1471_v54 }
  0x30   : > { %v610_v49 = vrot.slane %v585_v46, %v471_v44  ;;  %v614_v50 = vrot.slane %v585_v46, %v475_v45  ;;  %v472_v51 = vrot.slane %v449_v47, %v471_v44  ;;  %v476_v52 = vrot.slane %v449_v47, %v475_v45 }
  0x31   : > { %1126 = vperm.xlu0 %1513, %v1475_v19   ;;  %1121 = vperm.xlu1 %1514, %v1474_v20   ;;  %v911_v61 = vrot.slane %v886_v53, %v471_v44  ;;  %v915_v62 = vrot.slane %v886_v53, %v475_v45  ;;  %v1133_v8 = vrot.slane %v1108_v63, %v471_v44 }
  0x32   : > { %v620_v55 = vrot.slane %v610_v49, %v471_v44  ;;  %v624_v56 = vrot.slane %v614_v50, %v471_v44  ;;  %v482_v57 = vrot.slane %v472_v51, %v471_v44  ;;  %v486_v58 = vrot.slane %v476_v52, %v471_v44 }
  0x33   : > { %v921_v6 = vrot.slane %v911_v61, %v471_v44  ;;  %v925_v7 = vrot.slane %v915_v62, %v471_v44  ;;  %v1137_v9 = vrot.slane %v1108_v63, %v475_v45 }
  0x35   : > { %689 = vperm.xlu0 %1513, %v1448_v21   ;;  %551 = vperm.xlu1 %1514, %v543_v22  }
  0x39   : > { %684 = vperm.xlu0 %1513, %v1447_v23   ;;  %706 = vperm.xlu1 %1514, %v1450_v24   ;;  %v1143_v24 = vrot.slane %v1133_v8, %v471_v44 }
  0x3d   : > { %546 = vperm.xlu0 %1513, %v542_v25   ;;  %567 = vperm.xlu1 %1514, %v559_v26   ;;  %v1147_v25 = vrot.slane %v1137_v9, %v471_v44 }
  0x41   : > { %701 = vperm.xlu0 %1513, %v1449_v27   ;;  %990 = vperm.xlu1 %1514, %v1464_v28  }
  0x45   : > { %562 = vperm.xlu0 %1513, %v558_v29   ;;  %985 = vperm.xlu1 %1514, %v1463_v30  }
  0x49   : > { %1007 = vperm.xlu0 %1513, %v1466_v31   ;;  %1212 = vperm.xlu1 %1514, %v1477_v32  }
  0x4d   : > { %1002 = vperm.xlu0 %1513, %v1465_v33   ;;  %1207 = vperm.xlu1 %1514, %v1476_v34  }
  0x51   : > { %1229 = vperm.xlu0 %1513, %v1479_v35   ;;  %1224 = vperm.xlu1 %1514, %v1478_v36  }
  0x55   : > { %1331 = vperm.xlu0 %1513, %v1328_v37   ;;  %1339 = vperm.xlu1 %1514, %v1336_v38  }
  0xa0   : > { %v604_v59 = vpop.permute.xlu0 %603  ;;  %v466_v60 = vpop.permute.xlu1 %465 }
  0xa1   : > { %v1766_v0 = vmul.f32 %v620_v55, %v604_v59  ;;  %v1768_v1 = vmul.f32 %v624_v56, %v604_v59  ;;  %v1770_v2 = vmul.f32 %v482_v57, %v466_v60  ;;  %v1772_v3 = vmul.f32 %v486_v58, %v466_v60 }
  0xa3   : > { %v629_v14 = vsel %vm491_vm0, %v1766_v0, -inf  ;;  %v637_v15 = vsel %vm491_vm0, %v1768_v1, -inf  ;;  %v492_v16 = vsel %vm491_vm0, %v1770_v2, -inf  ;;  %v500_v17 = vsel %vm491_vm0, %v1772_v3, -inf }
  0xa4   : > { %v599_v4 = vpop.permute.xlu0 %598  ;;  %v461_v5 = vpop.permute.xlu1 %460 }
  0xa5   : > { %v1774_v10 = vmul.f32 %v620_v55, %v599_v4  ;;  %v1776_v11 = vmul.f32 %v624_v56, %v599_v4  ;;  %v1778_v12 = vmul.f32 %v482_v57, %v461_v5  ;;  %v1780_v13 = vmul.f32 %v486_v58, %v461_v5 }
  0xa7   : > { %v630_v18 = vmax.f32 %v1774_v10, %v629_v14  ;;  %v638_v19 = vmax.f32 %v1776_v11, %v637_v15  ;;  %v493_v20 = vmax.f32 %v1778_v12, %v492_v16  ;;  %v501_v21 = vmax.f32 %v1780_v13, %v500_v17 }
  0xa8   : > { %v905_v22 = vpop.permute.xlu0 %904  ;;  %v900_v23 = vpop.permute.xlu1 %899 }
  0xa9   : > { %v631_v26 = vrot.slane %v630_v18, 4  ;;  %v639_v27 = vrot.slane %v638_v19, 4  ;;  %v494_v28 = vrot.slane %v493_v20, 4  ;;  %v502_v29 = vrot.slane %v501_v21, 4 }
  0xaa   : > { %v1794_v30 = vmul.f32 %v921_v6, %v905_v22  ;;  %v1796_v31 = vmul.f32 %v925_v7, %v905_v22  ;;  %v1798_v32 = vmul.f32 %v921_v6, %v900_v23  ;;  %v1800_v33 = vmul.f32 %v925_v7, %v900_v23 }
  0xab   : > { %v632_v34 = vmax.f32 %v630_v18, %v631_v26  ;;  %v640_v35 = vmax.f32 %v638_v19, %v639_v27  ;;  %v495_v36 = vmax.f32 %v493_v20, %v494_v28  ;;  %v503_v37 = vmax.f32 %v501_v21, %v502_v29 }
  0xac   : > { %v930_v38 = vsel %vm491_vm0, %v1794_v30, -inf  ;;  %v938_v40 = vsel %vm491_vm0, %v1796_v31, -inf  ;;  %v1127_v41 = vpop.permute.xlu0 %1126  ;;  %v1122_v54 = vpop.permute.xlu1 %1121 }
  0xad   : > { %v633_v42 = vrot.slane %v632_v34, 2  ;;  %v641_v43 = vrot.slane %v640_v35, 2  ;;  %v496_v44 = vrot.slane %v495_v36, 2  ;;  %v504_v45 = vrot.slane %v503_v37, 2 }
  0xae   : > { %v931_v46 = vmax.f32 %v1798_v32, %v930_v38  ;;  %v939_v47 = vmax.f32 %v1800_v33, %v938_v40  ;;  %v1808_v48 = vmul.f32 %v1143_v24, %v1127_v41  ;;  %v1810_v49 = vmul.f32 %v1147_v25, %v1127_v41 }
  0xaf   : > { %v634_v50 = vmax.f32 %v632_v34, %v633_v42  ;;  %v642_v51 = vmax.f32 %v640_v35, %v641_v43  ;;  %v497_v52 = vmax.f32 %v495_v36, %v496_v44  ;;  %v505_v53 = vmax.f32 %v503_v37, %v504_v45 }
  0xb0   : > { %v932_v55 = vrot.slane %v931_v46, 4  ;;  %v940_v56 = vrot.slane %v939_v47, 4  ;;  %v1152_v57 = vsel %vm491_vm0, %v1808_v48, -inf  ;;  %v1160_v58 = vsel %vm491_vm0, %v1810_v49, -inf }
  0xb1   : > { %v635_v59 = vrot.slane %v634_v50, 1  ;;  %v643_v60 = vrot.slane %v642_v51, 1  ;;  %v498_v61 = vrot.slane %v497_v52, 1  ;;  %v506_v62 = vrot.slane %v505_v53, 1 }
  0xb2   : > { %v933_v63 = vmax.f32 %v931_v46, %v932_v55  ;;  %v941_v4 = vmax.f32 %v939_v47, %v940_v56  ;;  %v1816_v5 = vmul.f32 %v1143_v24, %v1122_v54  ;;  %v1818_v6 = vmul.f32 %v1147_v25, %v1122_v54 }
  0xb3   : > { %v636_v7 = vmax.f32 %v634_v50, %v635_v59  ;;  %v644_v8 = vmax.f32 %v642_v51, %v643_v60  ;;  %v499_v9 = vmax.f32 %v497_v52, %v498_v61  ;;  %v507_v14 = vmax.f32 %v505_v53, %v506_v62  ;;  %v1838_v59 = vpop.permute.xlu0 %689 }
  0xb4   : > { %v934_v15 = vrot.slane %v933_v63, 2  ;;  %v942_v16 = vrot.slane %v941_v4, 2  ;;  %v1153_v17 = vmax.f32 %v1816_v5, %v1152_v57  ;;  %v1161_v18 = vmax.f32 %v1818_v6, %v1160_v58 }
  0xb5   : > { %v645_v19 = vsub.f32 %v1774_v10, %v636_v7  ;;  %v646_v20 = vsub.f32 %v1776_v11, %v644_v8  ;;  %v647_v21 = vsub.f32 %v1766_v0, %v636_v7  ;;  %v648_v22 = vsub.f32 %v1768_v1, %v644_v8 }
  0xb6   : > { %v508_v23 = vsub.f32 %v1778_v12, %v499_v9  ;;  %v509_v24 = vsub.f32 %v1780_v13, %v507_v14  ;;  %v510_v25 = vsub.f32 %v1770_v2, %v499_v9  ;;  %v511_v26 = vsub.f32 %v1772_v3, %v507_v14  ;;  %v1850_v14 = vpop.permute.xlu1 %551 }
  0xb7   : > { %v649_v27 = vmul.f32 1.442695, %v645_v19  ;;  %v651_v28 = vmul.f32 1.442695, %v646_v20  ;;  %v653_v29 = vmul.f32 1.442695, %v647_v21  ;;  %v935_v34 = vmax.f32 %v933_v63, %v934_v15  ;;  %v1862_v19 = vpop.permute.xlu0 %684 }
  0xb8   : > { %v655_v35 = vmul.f32 1.442695, %v648_v22  ;;  %v943_v10 = vmax.f32 %v941_v4, %v942_v16  ;;  %v512_v11 = vmul.f32 1.442695, %v508_v23  ;;  %v514_v36 = vmul.f32 1.442695, %v509_v24 }
  0xb9   : > { %1515 = vpow2.f32 %v649_v27  ;;  %v936_v0 = vrot.slane %v935_v34, 1  ;;  %v1154_v37 = vrot.slane %v1153_v17, 4  ;;  %v1162_v12 = vrot.slane %v1161_v18, 4 }
  0xba   : > { %1517 = vpow2.f32 %v651_v28  ;;  %v944_v1 = vrot.slane %v943_v10, 1  ;;  %v516_v13 = vmul.f32 1.442695, %v510_v25  ;;  %v518_v38 = vmul.f32 1.442695, %v511_v26 }
  0xbb   : > { %1519 = vpow2.f32 %v653_v29  ;;  %v937_v2 = vmax.f32 %v935_v34, %v936_v0  ;;  %v1155_v40 = vmax.f32 %v1153_v17, %v1154_v37  ;;  %v1163_v41 = vmax.f32 %v1161_v18, %v1162_v12  ;;  %v1878_v29 = vpop.permute.xlu1 %706 }
  0xbc   : > { %1521 = vpow2.f32 %v655_v35  ;;  %v945_v3 = vmax.f32 %v943_v10, %v944_v1 }
  0xbd   : > { %1523 = vpow2.f32 %v512_v11  ;;  %v946_v42 = vsub.f32 %v1798_v32, %v937_v2  ;;  %v948_v43 = vsub.f32 %v1794_v30, %v937_v2  ;;  %v1156_v46 = vrot.slane %v1155_v40, 2 }
  0xbe   : > { %1525 = vpow2.f32 %v514_v36  ;;  %v947_v44 = vsub.f32 %v1800_v33, %v945_v3  ;;  %v949_v45 = vsub.f32 %v1796_v31, %v945_v3  ;;  %v1164_v51 = vrot.slane %v1163_v41, 2 }
  0xbf   : > { %1527 = vpow2.f32 %v516_v13  ;;  %v950_v47 = vmul.f32 1.442695, %v946_v42  ;;  %v954_v50 = vmul.f32 1.442695, %v948_v43  ;;  %v1157_v54 = vmax.f32 %v1155_v40, %v1156_v46  ;;  %v1895_v40 = vld [vmem:[%s1892_s27 + $0x18] sm:$0x11] }
  0xc0   : > { %1529 = vpow2.f32 %v518_v38  ;;  %v952_v52 = vmul.f32 1.442695, %v947_v44  ;;  %v956_v53 = vmul.f32 1.442695, %v949_v45  ;;  %v1165_v55 = vmax.f32 %v1163_v41, %v1164_v51  ;;  %v1889_v38 = vpop.permute.xlu0 %546  ;;  %v1898_v42 = vld [vmem:[%s1892_s27 + $0x8] sm:$0x11] }
  0xc1   : > { %1531 = vpow2.f32 %v950_v47  ;;  %v1158_v32 = vrot.slane %v1157_v54, 1  ;;  %v1901_v46 = vld [vmem:[%s1892_s27 + $0x10] sm:$0xff]  ;;  %v1903_v47 = vpop.permute.xlu1 %567  ;;  %v591_v51 = vunpack.c.l.bf16 %v1895_v40 }
  0xc2   : > { %1533 = vpow2.f32 %v952_v52  ;;  %v1166_v30 = vrot.slane %v1165_v55, 1 }
  0xc3   : > { %1535 = vpow2.f32 %v954_v50  ;;  %v1159_v56 = vmax.f32 %v1157_v54, %v1158_v32  ;;  %v454_v32 = vunpack.c.l.bf16 %v1898_v42 }
  0xc4   : > { %1537 = vpow2.f32 %v956_v53  ;;  %v1167_v33 = vmax.f32 %v1165_v55, %v1166_v30  ;;  %v592_v55 = vunpack.c.h.bf16 %v1895_v40 }
  0xc5   : > { %v1168_v31 = vsub.f32 %v1816_v5, %v1159_v56  ;;  %v1170_v58 = vsub.f32 %v1808_v48, %v1159_v56 }
  0xc6   : > { %v1834_v57 = vpop.eup %1515  ;;  %v1169_v61 = vsub.f32 %v1818_v6, %v1167_v33  ;;  %v1171_v62 = vsub.f32 %v1810_v49, %v1167_v33 }
  0xc7   : > { %v1840_v60 = vpop.eup %1517  ;;  %v1172_v4 = vmul.f32 1.442695, %v1168_v31  ;;  %v1176_v7 = vmul.f32 1.442695, %v1170_v58  ;;  %v455_v31 = vunpack.c.h.bf16 %v1898_v42  ;;  %v589_v58 = vunpack.c.l.bf16 %v1901_v46 }
  0xc8   : > { %v1844_v63 = vpop.eup %1519  ;;  %v1174_v9 = vmul.f32 1.442695, %v1169_v61  ;;  %v1178_v48 = vmul.f32 1.442695, %v1171_v62  ;;  %v1914_v61 = vpop.permute.xlu0 %701 }
  0xc9   : > { %v1846_v8 = vpop.eup %1521  ;;  %v657_v5 = vsel %vm491_vm0, %v1844_v63, 0.0  ;;  %1539 = vpow2.f32 %v1172_v4 }
  0xca   : > { %v1852_v15 = vpop.eup %1523  ;;  %v658_v6 = vadd.f32 %v1834_v57, %v657_v5  ;;  %v665_v49 = vsel %vm491_vm0, %v1846_v8, 0.0  ;;  %1541 = vpow2.f32 %v1174_v9 }
  0xcb   : > { %v1857_v16 = vpop.eup %1525  ;;  %v666_v17 = vadd.f32 %v1840_v60, %v665_v49  ;;  %1543 = vpow2.f32 %v1176_v7 }
  0xcc   : > { %v1860_v18 = vpop.eup %1527  ;;  %v659_v21 = vrot.slane %v658_v6, 4  ;;  %1545 = vpow2.f32 %v1178_v48 }
  0xcd   : > { %v1864_v20 = vpop.eup %1529  ;;  %v520_v22 = vsel %vm491_vm0, %v1860_v18, 0.0  ;;  %v667_v24 = vrot.slane %v666_v17, 4 }
  0xce   : > { %v1870_v23 = vpop.eup %1531  ;;  %v521_v25 = vadd.f32 %v1852_v15, %v520_v22  ;;  %v528_v26 = vsel %vm491_vm0, %v1864_v20, 0.0  ;;  %v660_v11 = vadd.f32 %v659_v21, %v658_v6 }
  0xcf   : > { %v1875_v27 = vpop.eup %1533  ;;  %v529_v28 = vadd.f32 %v1857_v16, %v528_v26  ;;  %v668_v1 = vadd.f32 %v667_v24, %v666_v17  ;;  %v590_v17 = vunpack.c.h.bf16 %v1901_v46  ;;  %v1926_v26 = vpop.permute.xlu1 %990 }
  0xd0   : > { %v1880_v34 = vpop.eup %1535  ;;  %v522_v35 = vrot.slane %v521_v25, 4  ;;  %v661_v43 = vrot.slane %v660_v11, 2 }
  0xd1   : > { %v1882_v10 = vpop.eup %1537  ;;  %v530_v36 = vrot.slane %v529_v28, 4  ;;  %v958_v0 = vsel %vm491_vm0, %v1880_v34, 0.0  ;;  %v669_v52 = vrot.slane %v668_v1, 2  ;;  %v693_v40 = vmul.f32 %v1862_v19, %v590_v17 }
  0xd2   : > { %v523_v37 = vadd.f32 %v522_v35, %v521_v25  ;;  %v959_v12 = vadd.f32 %v1870_v23, %v958_v0  ;;  %v966_v13 = vsel %vm491_vm0, %v1882_v10, 0.0  ;;  %v662_v9 = vadd.f32 %v661_v43, %v660_v11  ;;  %v1460_v43 = vld [vmem:[%s1892_s27 + $0x28] sm:$0x11] }
  0xd3   : > { %v531_v2 = vadd.f32 %v530_v36, %v529_v28  ;;  %v967_v3 = vadd.f32 %v1875_v27, %v966_v13  ;;  %v670_v62 = vadd.f32 %v669_v52, %v668_v1  ;;  %v986_v39 = vpop.permute.xlu1 %985 }
  0xd4   : > { %v960_v41 = vrot.slane %v959_v12, 4  ;;  %v524_v44 = vrot.slane %v523_v37, 2  ;;  %v663_v1 = vrot.slane %v662_v9, 1 }
  0xd5   : > { %v968_v45 = vrot.slane %v967_v3, 4  ;;  %v532_v30 = vrot.slane %v531_v2, 2  ;;  %v671_v22 = vrot.slane %v670_v62, 1 }
  0xd6   : > { %v961_v50 = vadd.f32 %v960_v41, %v959_v12  ;;  %v1906_v53 = vpop.eup %1539  ;;  %v525_v48 = vadd.f32 %v524_v44, %v523_v37  ;;  %v450_v12 = vld [vmem:[%s1892_s27] sm:$0xff]  ;;  %v563_v44 = vpop.permute.xlu0 %562 }
  0xd7   : > { %v969_v54 = vadd.f32 %v968_v45, %v967_v3  ;;  %v1910_v56 = vpop.eup %1541  ;;  %v533_v5 = vadd.f32 %v532_v30, %v531_v2  ;;  %v672_v0 = vadd.f32 %v671_v22, %v670_v62 }
  0xd8   : > { %v962_v33 = vrot.slane %v961_v50, 2  ;;  %v1916_v4 = vpop.eup %1543  ;;  %v526_v3 = vrot.slane %v525_v48, 1 }
  0xd9   : > { %v970_v7 = vrot.slane %v969_v54, 2  ;;  %v1918_v6 = vpop.eup %1545  ;;  %v1180_v49 = vsel %vm491_vm0, %v1916_v4, 0.0  ;;  %v534_v35 = vrot.slane %v533_v5, 1  ;;  %1547 = vrcp.f32 %v672_v0 }
  0xda   : > { %v963_v21 = vadd.f32 %v962_v33, %v961_v50  ;;  %v1181_v24 = vadd.f32 %v1906_v53, %v1180_v49  ;;  %v1188_v25 = vsel %vm491_vm0, %v1918_v6, 0.0  ;;  %v664_v50 = vadd.f32 %v663_v1, %v662_v9 }
  0xdb   : > { %v971_v28 = vadd.f32 %v970_v7, %v969_v54  ;;  %v1189_v11 = vadd.f32 %v1910_v56, %v1188_v25  ;;  %v535_v2 = vadd.f32 %v534_v35, %v533_v5  ;;  %v1932_v54 = vld [vmem:[%s1892_s27 + $0x20] sm:$0xff]  ;;  %v527_v33 = vadd.f32 %v526_v3, %v525_v48  ;;  %v1935_v5 = vld [vmem:[%s1892_s27 + $0x38] sm:$0x11] }
  0xdc   : > { %v964_v36 = vrot.slane %v963_v21, 1  ;;  %v1182_v37 = vrot.slane %v1181_v24, 4  ;;  %v452_v7 = vunpack.c.l.bf16 %v450_v12  ;;  %v453_v49 = vunpack.c.h.bf16 %v450_v12 }
  0xdd   : > { %v972_v13 = vrot.slane %v971_v28, 1  ;;  %v1190_v41 = vrot.slane %v1189_v11, 4  ;;  %1549 = vrcp.f32 %v535_v2  ;;  %v892_v25 = vunpack.c.l.bf16 %v1460_v43 }
  0xde   : > { %v965_v45 = vadd.f32 %v964_v36, %v963_v21  ;;  %v1183_v52 = vadd.f32 %v1182_v37, %v1181_v24  ;;  %v893_v35 = vunpack.c.h.bf16 %v1460_v43  ;;  %v1938_v21 = vld [vmem:[%s1892_s27 + $0x30] sm:$0xff]  ;;  %v890_v24 = vunpack.c.l.bf16 %v1932_v54  ;;  %v1008_v37 = vpop.permute.xlu0 %1007 }
  0xdf   : > { %v973_v30 = vadd.f32 %v972_v13, %v971_v28  ;;  %v1191_v62 = vadd.f32 %v1190_v41, %v1189_v11  ;;  %v891_v28 = vunpack.c.h.bf16 %v1932_v54  ;;  %v1114_v48 = vunpack.c.l.bf16 %v1935_v5 }
  0xe0   : > { %1551 = vrcp.f32 %v965_v45  ;;  %v1184_v22 = vrot.slane %v1183_v52, 2  ;;  %v1115_v11 = vunpack.c.h.bf16 %v1935_v5  ;;  %v694_v0 = vmul.f32 %v1838_v59, %v591_v51 }
  0xe1   : > { %1553 = vrcp.f32 %v973_v30  ;;  %v1192_v9 = vrot.slane %v1191_v62, 2  ;;  %v695_v1 = vmul.f32 %v1838_v59, %v592_v55  ;;  %v1112_v12 = vunpack.c.l.bf16 %v1938_v21 }
  0xe2   : > { %1555 = vrcp.f32 %v664_v50  ;;  %v1185_v36 = vadd.f32 %v1184_v22, %v1183_v52  ;;  %v556_v2 = vmul.f32 %v1850_v14, %v454_v32  ;;  %v557_v3 = vmul.f32 %v1850_v14, %v455_v31  ;;  %v1213_v14 = vpop.permute.xlu1 %1212  ;;  %v1003_v30 = vpop.permute.xlu0 %1002 }
  0xe3   : > { %1557 = vrcp.f32 %v527_v33  ;;  %v1193_v13 = vadd.f32 %v1192_v9, %v1191_v62  ;;  %v692_v51 = vmul.f32 %v1862_v19, %v589_v58  ;;  %v1962_v59 = vadd.f32 %v1878_v29, %v694_v0 }
  0xe4   : > { %v1186_v41 = vrot.slane %v1185_v36, 1  ;;  %v712_v55 = vadd.f32 %v1878_v29, %v695_v1  ;;  %v554_v45 = vmul.f32 %v1889_v38, %v452_v7  ;;  %v555_v32 = vmul.f32 %v1889_v38, %v453_v49 }
  0xe5   : > { %v1194_v43 = vrot.slane %v1193_v13, 1  ;;  %v1968_v42 = vadd.f32 %v1903_v47, %v556_v2  ;;  %v573_v31 = vadd.f32 %v1903_v47, %v557_v3  ;;  %v1972_v58 = vadd.f32 %v1914_v61, %v692_v51 }
  0xe6   : > { %v1187_v46 = vadd.f32 %v1186_v41, %v1185_v36  ;;  %v710_v19 = vadd.f32 %v1914_v61, %v693_v40  ;;  %v995_v29 = vmul.f32 %v1926_v26, %v892_v25  ;;  %v996_v50 = vmul.f32 %v1926_v26, %v893_v35  ;;  %v1548_v47 = vpop.eup %1547  ;;  %v1208_v1 = vpop.permute.xlu1 %1207 }
  0xe7   : > { %v1195_v17 = vadd.f32 %v1194_v43, %v1193_v13  ;;  %v1977_v52 = vadd.f32 %v563_v44, %v554_v45  ;;  %v715_v38 = vmax.f32 %v1962_v59, 0.0  ;;  %v571_v54 = vadd.f32 %v563_v44, %v555_v32 }
  0xe8   : > { %1559 = vrcp.f32 %v1187_v46  ;;  %v1113_v33 = vunpack.c.h.bf16 %v1938_v21  ;;  %v716_v62 = vmax.f32 %v712_v55, 0.0  ;;  %v576_v7 = vmax.f32 %v1968_v42, 0.0  ;;  %v1230_v42 = vpop.permute.xlu0 %1229 }
  0xe9   : > { %1561 = vrcp.f32 %v1195_v17  ;;  %v1012_v61 = vadd.f32 %v1008_v37, %v995_v29  ;;  %v1013_v49 = vadd.f32 %v1008_v37, %v996_v50  ;;  %v577_v22 = vmax.f32 %v573_v31, 0.0 }
  0xea   : > { %v1550_v5 = vpop.eup %1549  ;;  %v713_v26 = vmax.f32 %v1972_v58, 0.0  ;;  %v714_v25 = vmax.f32 %v710_v19, 0.0  ;;  %v678_v35 = vmul.f32 %v1548_v47, %v1846_v8  ;;  %v574_v44 = vmax.f32 %v1977_v52, 0.0  ;;  %v582_v52 = vld [vmem:[%s2048_s5] sm:$0xff] }
  0xeb   : > { %v993_v36 = vmul.f32 %v986_v39, %v890_v24  ;;  %v994_v0 = vmul.f32 %v986_v39, %v891_v28  ;;  %v541_v13 = vmul.f32 %v1550_v5, %v1864_v20  ;;  %v575_v3 = vmax.f32 %v571_v54, 0.0 }
  0xec   : > { %v1217_v51 = vmul.f32 %v1213_v14, %v1114_v48  ;;  %v1218_v37 = vmul.f32 %v1213_v14, %v1115_v11  ;;  %v720_v41 = vmul.f32 %v716_v62, %v678_v35  ;;  %v1016_v59 = vmax.f32 %v1012_v61, 0.0 }
  0xed   : > { %v1552_v9 = vpop.eup %1551  ;;  %v1017_v55 = vmax.f32 %v1013_v49, 0.0  ;;  %v581_v43 = vmul.f32 %v577_v22, %v541_v13  ;;  %v676_v8 = vmul.f32 %v1548_v47, %v1840_v60  ;;  %v539_v20 = vmul.f32 %v1550_v5, %v1857_v16  ;;  %v1225_v16 = vpop.permute.xlu1 %1224 }
  0xee   : > { %v1554_v2 = vpop.eup %1553  ;;  %1452 = vmatprep.subr.msk.mxu0 %vm491_vm0, %v720_v41  ;;  %v978_v28 = vmul.f32 %v1552_v9, %v1880_v34  ;;  %v1010_v48 = vadd.f32 %v1003_v30, %v993_v36  ;;  %v1011_v14 = vadd.f32 %v1003_v30, %v994_v0  ;;  %v1216_v46 = vmul.f32 %v1208_v1, %v1113_v33  ;;  %v1480_v36 = vld [vmem:[%s2048_s5 + $0x18] sm:$0xff] }
  0xef   : > { %v1556_v40 = vpop.eup %1555  ;;  %v979_v32 = vmul.f32 %v1554_v2, %v1882_v10  ;;  %1455 = vmatprep.subr.msk.mxu1 %vm491_vm0, %v581_v43  ;;  %v1215_v10 = vmul.f32 %v1208_v1, %v1112_v12  ;;  %v1235_v58 = vadd.f32 %v1230_v42, %v1218_v37  ;;  %v579_v34 = vmul.f32 %v575_v3, %v539_v20 }
  0xf0   : > { %v1558_v45 = vpop.eup %1557  ;;  %v677_v39 = vmul.f32 %v1556_v40, %v1844_v63  ;;  %v675_v24 = vmul.f32 %v1556_v40, %v1834_v57  ;;  %v1234_v63 = vadd.f32 %v1230_v42, %v1217_v51  ;;  %v718_v57 = vmul.f32 %v714_v25, %v676_v8  ;;  %v1332_v8 = vpop.permute.xlu0 %1331 }
  0xf1   : > { %v540_v11 = vmul.f32 %v1558_v45, %v1860_v18  ;;  %v538_v60 = vmul.f32 %v1558_v45, %v1852_v15  ;;  %v1021_v17 = vmul.f32 %v1017_v55, %v979_v32  ;;  %v1451_v15 = vld [vmem:[%s2048_s5 + $0x8] sm:$0xff]  ;;  %v977_v18 = vmul.f32 %v1554_v2, %v1875_v27 }
  0xf2   : > { %v719_v31 = vmul.f32 %v715_v38, %v677_v39  ;;  %v717_v29 = vmul.f32 %v713_v26, %v675_v24  ;;  %v1020_v21 = vmul.f32 %v1016_v59, %v978_v28  ;;  %v976_v12 = vmul.f32 %v1552_v9, %v1870_v23  ;;  %v1340_v39 = vpop.permute.xlu1 %1339 }
  0xf3   : > { %v580_v19 = vmul.f32 %v576_v7, %v540_v11  ;;  %v578_v50 = vmul.f32 %v574_v44, %v538_v60  ;;  %v1015_v54 = vmax.f32 %v1011_v14, 0.0  ;;  %v1233_v30 = vadd.f32 %v1225_v16, %v1216_v46 }
  0xf4   : > { %1453 = vmatpush1.msk.msra.mxu0 %vm491_vm0, %v719_v31  ;;  %v1014_v47 = vmax.f32 %v1010_v48, 0.0  ;;  %v1238_v62 = vmax.f32 %v1234_v63, 0.0  ;;  %v1232_v7 = vadd.f32 %v1225_v16, %v1215_v10  ;;  %v1239_v61 = vmax.f32 %v1235_v58, 0.0 }
  0xf5   : > { %1456 = vmatpush1.msk.msra.mxu1 %vm491_vm0, %v580_v19  ;;  %763 = vmatprep.subr.mxu0 %v718_v57  ;;  %v1560_v38 = vpop.eup %1559  ;;  %v1019_v49 = vmul.f32 %v1015_v54, %v977_v18  ;;  %v1237_v9 = vmax.f32 %v1233_v30, 0.0 }
  0xf6   : > { %843 = vmatprep.subr.mxu1 %v579_v34  ;;  %764 = vmatpush1.msra.mxu0 %v717_v29  ;;  %v1562_v33 = vpop.eup %1561  ;;  %v1200_v27 = vmul.f32 %v1560_v38, %v1916_v4  ;;  %v1018_v22 = vmul.f32 %v1014_v47, %v976_v12  ;;  %v1198_v25 = vmul.f32 %v1560_v38, %v1906_v53  ;;  %v2055_v4 = vmov 0.0  }
  0xf7   : > { %844 = vmatpush1.msra.mxu1 %v578_v50  ;;  %1454 = vmatmul.mubr.msk.f32.vlgmr.msra.gmra.mxu0 %vm723_vm1, %v1451_v15  ;;  %v1201_v23 = vmul.f32 %v1562_v33, %v1918_v6  ;;  %v1199_v5 = vmul.f32 %v1562_v33, %v1910_v56  ;;  %v1467_v6 = vld [vmem:[%s2048_s5 + $0x10] sm:$0xff]  ;;  %v1236_v44 = vmax.f32 %v1232_v7, 0.0 }
  0xf8   : > { %1468 = vmatprep.subr.msk.mxu0 %vm491_vm0, %v1021_v17  ;;  %1457 = vmatmul.mubr.msk.f32.vlgmr.msra.gmra.mxu1 %vm723_vm1, %v582_v52  ;;  %v1242_v26 = vmul.f32 %v1238_v62, %v1200_v27 }
  0xf9   : > { %1469 = vmatpush1.msk.msra.mxu0 %vm491_vm0, %v1020_v21  ;;  %1097 = vmatprep.mubr.f32.mxu0 %v2055_v4  ;;  %v1243_v35 = vmul.f32 %v1239_v61, %v1201_v23  ;;  %v1241_v53 = vmul.f32 %v1237_v9, %v1199_v5  ;;  %v1240_v56 = vmul.f32 %v1236_v44, %v1198_v25 }
  0xfa   : > { %1063 = vmatprep.subr.mxu0 %v1019_v49  ;;  %1319 = vmatprep.mubr.f32.mxu1 %v2055_v4 }
  0xfb   : > { %1064 = vmatpush1.msra.mxu0 %v1018_v22  ;;  %1481 = vmatprep.subr.msk.mxu1 %vm491_vm0, %v1243_v35 }
  0xfc   : > { %1470 = vmatmul.mubr.msk.f32.vlgmr.msra.gmra.mxu0 %vm723_vm1, %v1467_v6  ;;  %1482 = vmatpush1.msk.msra.mxu1 %vm491_vm0, %v1242_v26 }
  0xfd   : > { %1285 = vmatprep.subr.mxu1 %v1241_v53 }
  0xfe   : > { %1286 = vmatpush1.msra.mxu1 %v1240_v56 }
  0xff   : > { %1483 = vmatmul.mubr.msk.f32.vlgmr.msra.gmra.mxu1 %vm723_vm1, %v1480_v36 }
 0x1b7   : > { %v799_v0 = vpop.f32.mrf.mxu0 }
 0x1b8   : > { %v879_v1 = vpop.f32.mrf.mxu1 }
 0x1b9   : > { %v801_v13 = vpop.f32.mrf.mxu0  ;;  %v880_v2 = vadd.f32 %v879_v1, %v799_v0 }
 0x1ba   : > { %v881_v3 = vpop.f32.mrf.mxu1 }
 0x1bb   : > { %v882_v41 = vadd.f32 %v881_v3, %v801_v13 }
 0x1bc   : > { %v1099_v51 = vpop.f32.mrf.mxu0 }
 0x1bd   : > { %v1104_v40 = vadd.f32 %v1099_v51, %v880_v2 }
 0x1be   : > { %v1101_v37 = vpop.f32.mrf.mxu0 }
 0x1bf   : > { %v1321_v59 = vpop.f32.mrf.mxu1  ;;  %v1105_v55 = vadd.f32 %v1101_v37, %v882_v41 }
 0x1c0   : > { %v1326_v43 = vadd.f32 %v1321_v59, %v1104_v40 }
 0x1c1   : > { %v1323_v45 = vpop.f32.mrf.mxu1 }
 0x1c2   : > { %v1334_v32 = vmul.f32 %v1332_v8, %v1326_v43  ;;  %v1327_v42 = vadd.f32 %v1323_v45, %v1105_v55 }
 0x1c4   : > { %v1342_v20 = vadd.f32 %v1340_v39, %v1334_v32  ;;  %v1335_v24 = vmul.f32 %v1332_v8, %v1327_v42 }
 0x1c6   : > { %v1344_v28 = vmax.f32 %v1342_v20, 0.0  ;;  %v1343_v48 = vadd.f32 %v1340_v39, %v1335_v24 }
 0x1c8   : > { %1346 = vst [vmem:[%s446_s14] sm:$0xff] %v1344_v28  ;;  %v1345_v11 = vmax.f32 %v1343_v48, 0.0 }
 0x1ca   : > { %1347 = vst [vmem:[%s446_s14 + $0x8] sm:$0xff] %v1345_v11 }
 0x1cb PF: > { %p15_p9 = scmp.ge.s32.totalorder %s1651_s9, 4   ;;  %s2056_s27 = smov %s1581_s28 }
 0x1cc   : > { %s2057_s28 = smov %s1660_s12  ;;  %s2058_s29 = smov %s1651_s9 }
 0x1cd   :  { %17 = sbr.rel (!%p15_p9) target bundleno = 2 (0x2), region = 192 }

</bundles_post_ra>
